<compile_context>
chip_gen: v6e
topology: v6e:2x2x1
jax: 0.10.0
libtpu: 0.0.40
codegen_flags: <defaults>
</compile_context>

<pallas_src>
import functools
import math

import jax
import jax.numpy as jnp
from jax.experimental import pallas as pl
from jax.experimental.pallas import tpu as pltpu


def _round_up(x, m):
    return ((x + m - 1) // m) * m


def _wmse_kernel(w_ref, yh_ref, y_ref, out_ref, acc_ref, *,
                 nrows, ncols, tr, tc, rt_chunk, ct_chunk, split_rows,
                 mask_rows, mask_cols):
    """Accumulate sum_{r,c} w[r] * (y_hat[r,c] - y[r,c])^2 over the grid.

    w_ref:   (tr, 1)   per-row weights (f32)
    yh_ref:  (tr, tc)  prediction tile
    y_ref:   (tr, tc)  target tile
    out_ref: (1, 1)    partial sum for this parallel chunk (f32)
    acc_ref: (tr, tc)  VMEM f32 accumulator; elementwise adds only in steady state
    """
    p = pl.program_id(0)   # parallel chunk (megacore on v7x, serial outer loop elsewhere)
    i = pl.program_id(1)   # row-tile within chunk   ("arbitrary")
    k = pl.program_id(2)   # col-tile within chunk   ("arbitrary")

    @pl.when(jnp.logical_and(i == 0, k == 0))
    def _init():
        acc_ref[...] = jnp.zeros_like(acc_ref)

    diff = yh_ref[...].astype(jnp.float32) - y_ref[...].astype(jnp.float32)
    weighted = w_ref[...].astype(jnp.float32) * (diff * diff)   # (tr,1)*(tr,tc), pure VPU

    if mask_rows or mask_cols:
        # Global tile coordinates (chunks divide evenly, so no clamping is ever needed).
        if split_rows:
            gi = p * rt_chunk + i
            gk = k
        else:
            gi = i
            gk = p * ct_chunk + k
        row_start = gi * tr
        col_start = gk * tc

        conds = []
        if mask_rows:
            conds.append(row_start + tr > nrows)
        if mask_cols:
            conds.append(col_start + tc > ncols)
        ragged = conds[0]
        for c in conds[1:]:
            ragged = jnp.logical_or(ragged, c)

        @pl.when(jnp.logical_not(ragged))
        def _fast():
            # Fully in-bounds tile: no iota/compare/select in the steady state.
            acc_ref[...] = acc_ref[...] + weighted

        @pl.when(ragged)
        def _edge():
            valid = None
            if mask_rows:
                sub = jax.lax.broadcasted_iota(jnp.int32, weighted.shape, 0)
                valid = sub < (nrows - row_start)
            if mask_cols:
                lane = jax.lax.broadcasted_iota(jnp.int32, weighted.shape, 1)
                vc = lane < (ncols - col_start)
                valid = vc if valid is None else jnp.logical_and(valid, vc)
            # jnp.where (select), NOT multiply-by-mask: NaN/Inf padding can never propagate.
            acc_ref[...] = acc_ref[...] + jnp.where(valid, weighted, 0.0)
    else:
        acc_ref[...] = acc_ref[...] + weighted     # VPU-only steady state

    @pl.when(jnp.logical_and(i == pl.num_programs(1) - 1,
                             k == pl.num_programs(2) - 1))
    def _finalize():
        # Single XLU reduce, once per parallel chunk.
        out_ref[...] = jnp.sum(acc_ref[...]).reshape(1, 1)


def weighted_mse_loss(y_hat, y, weight, *,
                      target_tile_bytes=None,
                      vmem_limit_bytes=None):
    """Pallas equivalent of WeightedMSELoss.forward for (N, C, ...) inputs."""
    if y_hat.shape != y.shape:
        raise ValueError('y_hat and y must have the same shape.')
    if y_hat.ndim < 2:
        raise ValueError('Expected at least (batch, classes, ...) input.')
    N, C = y_hat.shape[0], y_hat.shape[1]
    if weight.shape[0] != C:
        raise ValueError(
            'Length of weight list must be the same as the number of classes.')

    numel = y_hat.size
    R = N * C
    Mcol = int(math.prod(y_hat.shape[2:]))          # 1 if no spatial dims

    itemsize = y_hat.dtype.itemsize
    # Sublane packing: 8 rows/vreg for f32, 16 for bf16, 32 for int8/fp8.
    sub_mult = 8 * max(1, 4 // max(1, itemsize))

    # ---- VMEM / tile budgets (generation-aware, conservative fallback). ----
    if vmem_limit_bytes is None:
        try:
            vmem_cap = int(pltpu.get_tpu_info().vmem_capacity_bytes)
        except Exception:
            vmem_cap = 64 << 20                      # v7x per-TC physical VMEM (safe floor)
        vmem_limit_bytes = min((vmem_cap * 3) // 4, 96 << 20)
    if target_tile_bytes is None:
        # Footprint ~= 2 inputs x 2 pipeline buffers x tile + f32 accumulator (+15% margin).
        mult = 4.0 + 4.0 / itemsize
        target_tile_bytes = int(vmem_limit_bytes / (mult * 1.15))
        target_tile_bytes = min(target_tile_bytes, 8 << 20)   # >8 MiB: negligible gain
    target_tile_bytes = max(int(target_tile_bytes), 128 * 8 * itemsize)

    row_bytes = max(1, Mcol * itemsize)

    # ---- Row tile: dtype-aware sublane multiple, or full extent. ----
    if R * row_bytes <= target_tile_bytes or R <= sub_mult:
        tr = R                                       # full-extent block: always legal, no mask
    elif sub_mult * row_bytes <= target_tile_bytes or Mcol <= 128:
        tr = max(sub_mult,
                 (target_tile_bytes // row_bytes) // sub_mult * sub_mult)
        tr = min(tr, _round_up(R, sub_mult))
    else:
        tr = sub_mult

    # ---- Column tile: prefer whole rows (contiguous HBM bursts, no col mask). ----
    if tr * row_bytes <= target_tile_bytes or Mcol <= 128:
        tc = Mcol
    else:
        tc = max(128, (target_tile_bytes // (tr * itemsize)) // 128 * 128)
        tc = min(tc, _round_up(Mcol, 128))
        if tc >= Mcol:
            tc = Mcol

    rt_total = pl.cdiv(R, tr)
    ct_total = pl.cdiv(Mcol, tc)
    mask_rows = (rt_total * tr) != R
    mask_cols = (ct_total * tc) != Mcol

    # ---- Parallel chunks: only split when the split is exact (no re-reads, no
    #      dead tiles). Rows preferred so each chunk keeps whole rows. Uses both
    #      TensorCores on v7x; a negligible serial outer loop on v5e/v6e. ----
    if rt_total >= 2 and rt_total % 2 == 0:
        p_chunks, split_rows = 2, True
        rt_chunk, ct_chunk = rt_total // 2, ct_total
    elif ct_total >= 2 and ct_total % 2 == 0:
        p_chunks, split_rows = 2, False
        rt_chunk, ct_chunk = rt_total, ct_total // 2
    else:
        p_chunks, split_rows = 1, True
        rt_chunk, ct_chunk = rt_total, ct_total

    # Contiguous reshape of row-major (N, C, ...) -> (N*C, prod(spatial)): no HBM copy.
    yh2 = y_hat.reshape(R, Mcol)
    y2 = y.reshape(R, Mcol)
    # Per-row weight = weight[row % C]; tiny, built once.
    w_rows = jnp.tile(weight.astype(jnp.float32).reshape(-1), N).reshape(R, 1)

    if split_rows:
        def row_blk(p, i, k): return p * rt_chunk + i
        def col_blk(p, i, k): return k
    else:
        def row_blk(p, i, k): return i
        def col_blk(p, i, k): return p * ct_chunk + k

    kernel = functools.partial(
        _wmse_kernel, nrows=R, ncols=Mcol, tr=tr, tc=tc,
        rt_chunk=rt_chunk, ct_chunk=ct_chunk, split_rows=split_rows,
        mask_rows=mask_rows, mask_cols=mask_cols)

    partials = pl.pallas_call(
        kernel,
        out_shape=jax.ShapeDtypeStruct((p_chunks, 1), jnp.float32),
        grid_spec=pltpu.PrefetchScalarGridSpec(
            num_scalar_prefetch=0,
            grid=(p_chunks, rt_chunk, ct_chunk),
            in_specs=[
                pl.BlockSpec((tr, 1),
                             lambda p, i, k: (row_blk(p, i, k), 0)),
                pl.BlockSpec((tr, tc),
                             lambda p, i, k: (row_blk(p, i, k), col_blk(p, i, k))),
                pl.BlockSpec((tr, tc),
                             lambda p, i, k: (row_blk(p, i, k), col_blk(p, i, k))),
            ],
            out_specs=pl.BlockSpec((1, 1), lambda p, i, k: (p, 0)),
            scratch_shapes=[pltpu.VMEM((tr, tc), jnp.float32)],
        ),
        compiler_params=pltpu.CompilerParams(
            dimension_semantics=("parallel", "arbitrary", "arbitrary"),
            vmem_limit_bytes=int(vmem_limit_bytes)),
    )(w_rows, yh2, y2)

    return jnp.sum(partials) / numel


def _reference(y_hat, y, weight):
    # Pure-JAX reference matching the PyTorch module semantics.
    loss = 0.0
    for i in range(weight.shape[0]):
        mse_class = (y_hat[:, i, ...] - y[:, i, ...]) ** 2
        loss = loss + weight[i] * jnp.sum(mse_class)
    return loss / y_hat.size


if __name__ == "__main__":
    key = jax.random.PRNGKey(0)
    k1, k2, k3, k4, k5, k6 = jax.random.split(key, 6)

    # Primary case: module's NCHW convention; hits the fully unmasked fast path.
    N, C, H, W = 2, 4, 16, 16
    y_hat = jax.random.normal(k1, (N, C, H, W), dtype=jnp.float32)
    y = jax.random.normal(k2, (N, C, H, W), dtype=jnp.float32)
    weight = jnp.array([1.0, 2.0, 0.5, 4.0], dtype=jnp.float32)

    loss = weighted_mse_loss(y_hat, y, weight)
    loss = jax.block_until_ready(loss)
    ref = _reference(y_hat, y, weight)
    assert jnp.allclose(loss, ref, rtol=1e-5, atol=1e-6), (loss, ref)

    # Secondary case: ragged columns + exact 2-way column chunking (gated col mask).
    N2, C2, H2, W2 = 1, 8, 10, 20
    y_hat2 = jax.random.normal(k3, (N2, C2, H2, W2), dtype=jnp.float32)
    y2 = jax.random.normal(k4, (N2, C2, H2, W2), dtype=jnp.float32)
    weight2 = jnp.arange(1.0, C2 + 1.0, dtype=jnp.float32) / C2
    loss2 = weighted_mse_loss(y_hat2, y2, weight2, target_tile_bytes=4096)
    loss2 = jax.block_until_ready(loss2)
    ref2 = _reference(y_hat2, y2, weight2)
    assert jnp.allclose(loss2, ref2, rtol=1e-5, atol=1e-6), (loss2, ref2)

    # Third case: ragged ROW tiles (R=40, tr=16 -> last tile masked via gated row mask).
    N3, C3, H3, W3 = 10, 4, 8, 8
    y_hat3 = jax.random.normal(k5, (N3, C3, H3, W3), dtype=jnp.float32)
    y3 = jax.random.normal(k6, (N3, C3, H3, W3), dtype=jnp.float32)
    weight3 = jnp.array([0.25, 1.5, 3.0, 0.75], dtype=jnp.float32)
    loss3 = weighted_mse_loss(y_hat3, y3, weight3, target_tile_bytes=4096)
    loss3 = jax.block_until_ready(loss3)
    ref3 = _reference(y_hat3, y3, weight3)
    assert jnp.allclose(loss3, ref3, rtol=1e-5, atol=1e-6), (loss3, ref3)

    print("KERNEL_OK")
</pallas_src>

<mosaic_0001>
module attributes {stable_mosaic.version = 11 : i64} {
  func.func @_wmse_kernel(%arg0: i32, %arg1: i32, %arg2: i32, %arg3: memref<8x1xf32, #tpu.memory_space<vmem>>, %arg4: memref<8x256xf32, #tpu.memory_space<vmem>>, %arg5: memref<8x256xf32, #tpu.memory_space<vmem>>, %arg6: memref<1x1xf32, #tpu.memory_space<vmem>>, %arg7: memref<8x256xf32, #tpu.memory_space<vmem>>) attributes {dimension_semantics = [#tpu.dimension_semantics<parallel>, #tpu.dimension_semantics<arbitrary>, #tpu.dimension_semantics<arbitrary>], iteration_bounds = array<i64: 1, 1, 1>, scalar_prefetch = 0 : i64, scratch_operands = 1 : i64, tpu.core_type = #tpu.core_type<tc>, window_params = [{transform_indices = @transform_0, window_bounds = array<i64: 8, 1>}, {transform_indices = @transform_1, window_bounds = array<i64: 8, 256>}, {transform_indices = @transform_2, window_bounds = array<i64: 8, 256>}, {transform_indices = @transform_3, window_bounds = array<i64: 1, 1>}]} {
    %c0_i32 = arith.constant 0 : i32
    %0 = arith.cmpi eq, %arg1, %c0_i32 : i32
    %c0_i32_0 = arith.constant 0 : i32
    %1 = arith.cmpi eq, %arg2, %c0_i32_0 : i32
    %2 = arith.andi %0, %1 : i1
    %3 = arith.extui %2 : i1 to i32
    %c0_i32_1 = arith.constant 0 : i32
    %4 = arith.cmpi ne, %3, %c0_i32_1 : i32
    scf.if %4 {
      %cst = arith.constant 0.000000e+00 : f32
      %20 = vector.broadcast %cst : f32 to vector<8x256xf32>
      %c0_14 = arith.constant 0 : index
      %c0_15 = arith.constant 0 : index
      %21 = vector.load %arg7[%c0_14, %c0_15] : memref<8x256xf32, #tpu.memory_space<vmem>>, vector<8x256xf32>
      tpu.vector_store %arg7[%c0_14, %c0_15], %20 {strides = array<i32>} : memref<8x256xf32, #tpu.memory_space<vmem>>, vector<8x256xf32>,
    } else {
    }
    %c0 = arith.constant 0 : index
    %c0_2 = arith.constant 0 : index
    %5 = vector.load %arg4[%c0, %c0_2] : memref<8x256xf32, #tpu.memory_space<vmem>>, vector<8x256xf32>
    %c0_3 = arith.constant 0 : index
    %c0_4 = arith.constant 0 : index
    %6 = vector.load %arg5[%c0_3, %c0_4] : memref<8x256xf32, #tpu.memory_space<vmem>>, vector<8x256xf32>
    %7 = arith.subf %5, %6 : vector<8x256xf32>
    %c0_5 = arith.constant 0 : index
    %c0_6 = arith.constant 0 : index
    %8 = vector.load %arg3[%c0_5, %c0_6] : memref<8x1xf32, #tpu.memory_space<vmem>>, vector<8x1xf32>
    %9 = arith.mulf %7, %7 : vector<8x256xf32>
    %10 = vector.broadcast %8 : vector<8x1xf32> to vector<8x256xf32>
    %11 = arith.mulf %10, %9 : vector<8x256xf32>
    %c0_7 = arith.constant 0 : index
    %c0_8 = arith.constant 0 : index
    %12 = vector.load %arg7[%c0_7, %c0_8] : memref<8x256xf32, #tpu.memory_space<vmem>>, vector<8x256xf32>
    %13 = arith.addf %12, %11 : vector<8x256xf32>
    %c0_9 = arith.constant 0 : index
    %c0_10 = arith.constant 0 : index
    %14 = vector.load %arg7[%c0_9, %c0_10] : memref<8x256xf32, #tpu.memory_space<vmem>>, vector<8x256xf32>
    tpu.vector_store %arg7[%c0_9, %c0_10], %13 {strides = array<i32>} : memref<8x256xf32, #tpu.memory_space<vmem>>, vector<8x256xf32>,
    %c0_i32_11 = arith.constant 0 : i32
    %15 = arith.cmpi eq, %arg1, %c0_i32_11 : i32
    %c0_i32_12 = arith.constant 0 : i32
    %16 = arith.cmpi eq, %arg2, %c0_i32_12 : i32
    %17 = arith.andi %15, %16 : i1
    %18 = arith.extui %17 : i1 to i32
    %c0_i32_13 = arith.constant 0 : i32
    %19 = arith.cmpi ne, %18, %c0_i32_13 : i32
    scf.if %19 {
      %c0_14 = arith.constant 0 : index
      %c0_15 = arith.constant 0 : index
      %20 = vector.load %arg7[%c0_14, %c0_15] : memref<8x256xf32, #tpu.memory_space<vmem>>, vector<8x256xf32>
      %21 = vector.shape_cast %20 : vector<8x256xf32> to vector<1x8x256xf32>
      %cst = arith.constant dense<0.000000e+00> : vector<1xf32>
      %22 = vector.multi_reduction <add>, %21, %cst [1, 2] : vector<1x8x256xf32> to vector<1xf32>
      %23 = vector.shape_cast %22 : vector<1xf32> to vector<1x1x1xf32>
      %24 = vector.extract %23[0, 0, 0] : f32 from vector<1x1x1xf32>
      %25 = vector.broadcast %24 : f32 to vector<1x1xf32>
      %c0_16 = arith.constant 0 : index
      %c0_17 = arith.constant 0 : index
      %26 = vector.load %arg6[%c0_16, %c0_17] : memref<1x1xf32, #tpu.memory_space<vmem>>, vector<1x1xf32>
      tpu.vector_store %arg6[%c0_16, %c0_17], %25 {strides = array<i32>} : memref<1x1xf32, #tpu.memory_space<vmem>>, vector<1x1xf32>,
    } else {
    }
    return
  }
  func.func @transform_0(%arg0: i32, %arg1: i32, %arg2: i32) -> (i32, i32) {
    %c1_i32 = arith.constant 1 : i32
    %0 = arith.muli %arg0, %c1_i32 : i32
    %1 = arith.addi %0, %arg1 : i32
    %c0_i32 = arith.constant 0 : i32
    %c0_i32_0 = arith.constant 0 : i32
    return %1, %c0_i32 : i32, i32
  }
  func.func @transform_1(%arg0: i32, %arg1: i32, %arg2: i32) -> (i32, i32) {
    %c1_i32 = arith.constant 1 : i32
    %0 = arith.muli %arg0, %c1_i32 : i32
    %1 = arith.addi %0, %arg1 : i32
    %c0_i32 = arith.constant 0 : i32
    return %1, %arg2 : i32, i32
  }
  func.func @transform_2(%arg0: i32, %arg1: i32, %arg2: i32) -> (i32, i32) {
    %c1_i32 = arith.constant 1 : i32
    %0 = arith.muli %arg0, %c1_i32 : i32
    %1 = arith.addi %0, %arg1 : i32
    %c0_i32 = arith.constant 0 : i32
    return %1, %arg2 : i32, i32
  }
  func.func @transform_3(%arg0: i32, %arg1: i32, %arg2: i32) -> (i32, i32) {
    %c0_i32 = arith.constant 0 : i32
    %c0_i32_0 = arith.constant 0 : i32
    return %arg0, %c0_i32 : i32, i32
  }
}

</mosaic_0001>

<bundles_post_ra>
// kernel: tpu_custom_call.1
= control target key start
LH: loop header
LB: loop body
LE: loop exit
PB: predicated region body
PF: predicated region fallthrough
CT: control target
= control target key end

     0   :  { %8 = vsyncpa [#allocation4], 0  ;;  %s244_s0 = inlined_call_operand.vmem [shape: f32[8,1], index: 0, kind: input, shape index: {}]   ;;  %s245_s1 = inlined_call_operand.hbm [shape: f32[8,256], index: 1, kind: input, shape index: {}]   ;;  %s246_s2 = inlined_call_operand.hbm [shape: f32[8,256], index: 2, kind: input, shape index: {}]   ;;  %s247_s3 = inlined_call_operand.hbm [shape: f32[1,1], index: 3, kind: output, shape index: {}]  }
   0x1   :  { %9 = vsyncpa [#allocation7], 0 }
   0x2   :  { %10 = vsyncpa [#allocation5], 0  ;;  %s208_s12 = smov [#allocation3]   ;;  %s209_s14 = smov [#allocation6]  }
   0x3   :  { %s29_s13 = sshll.u32 %s208_s12, 4  ;;  %s43_s15 = sshll.u32 %s209_s14, 4  ;;  %s30_s13 = int_to_ptr.vmem [resolvable:$true] %s29_s13  ;;  %s44_s15 = int_to_ptr.vmem [resolvable:$true] %s43_s15 }
   0x4   :  { %s150_s16 = scalar_lea.vmem %s30_s13, 256  ;;  %p155_p1 = scmp.lt.s32.totalorder %s30_s13, %s30_s13 }
   0x5   :  { %p151_p0 = scmp.ne.s32.totalorder %s30_s13, %s150_s16  ;;  %p156_p2 = scmp.lt.s32.totalorder %s150_s16, %s150_s16 }
   0x7   :  { %p157_p3 = por %p156_p2, %p155_p1 }
   0x9   :  { %p158_p4 = pnand %p157_p3, %p151_p0 }
   0xb   :  { %161 = shalt.err (!%p158_p4)
}
   0xc   :  { %32 = dma.hbm_to_vmem [thread:$0]  %s245_s1, 256, %s30_s13, [#allocation4]  }
   0xd   :  { %s170_s19 = scalar_lea.vmem %s44_s15, 256  ;;  %p175_p6 = scmp.lt.s32.totalorder %s44_s15, %s44_s15 }
   0xe   :  { %p171_p5 = scmp.ne.s32.totalorder %s44_s15, %s170_s19  ;;  %p176_p7 = scmp.lt.s32.totalorder %s170_s19, %s170_s19 }
  0x10   :  { %p177_p8 = por %p176_p7, %p175_p6 }
  0x12   :  { %p178_p9 = pnand %p177_p8, %p171_p5 }
  0x14   :  { %181 = shalt.err (!%p178_p9)
}
  0x15   :  { %46 = dma.hbm_to_vmem [thread:$0]  %s246_s2, 256, %s44_s15, [#allocation7]  }
  0x16   :  { %202 = dma.done.wait [#allocation4], 256  }
  0x17   :  { %203 = vsyncadd [#allocation4], 4294967040 }
  0x18   :  { %204 = dma.done.wait [#allocation7], 256  }
  0x19   :  { %205 = vsyncadd [#allocation7], 4294967040  ;;  %v210_v0 = vmov 0   ;;  %v80_v1 = vld [vmem:[%s244_s0] sm:$0xff]  ;;  %v75_v3 = vld [vmem:[#allocation3 + $0x8] sm:$0xff]  ;;  %s211_s0 = smov [#allocation8]  }
  0x1a   :  { %141 = vset.pattern.permute.xlu0 %v210_v0  ;;  %v74_v2 = vld [vmem:[#allocation3] sm:$0xff]  ;;  %v76_v4 = vld [vmem:[#allocation6] sm:$0xff]  ;;  %v77_v5 = vld [vmem:[#allocation6 + $0x8] sm:$0xff]  ;;  %s119_s1 = sshll.u32 %s211_s0, 4  ;;  %vm111_vm0 = vcmask 0   ;;  %s120_s1 = int_to_ptr.vmem [resolvable:$true] %s119_s1 }
  0x1b   :  { %85 = vperm.xlu0 %141, %v80_v1   ;;  %v78_v6 = vsub.f32 %v74_v2, %v76_v4  ;;  %v79_v7 = vsub.f32 %v75_v3, %v77_v5  ;;  %s182_s24 = scalar_lea.vmem %s120_s1, 16  ;;  %s186_s25 = scalar_lea.vmem %s120_s1, 32 }
  0x1c   :  { %p183_p10 = scmp.ne.s32.totalorder %s120_s1, %s182_s24  ;;  %p187_p11 = scmp.lt.s32.totalorder %s120_s1, %s120_s1 }
  0x1d   :  { %v81_v8 = vmul.f32 %v78_v6, %v78_v6  ;;  %v82_v9 = vmul.f32 %v79_v7, %v79_v7  ;;  %p188_p12 = scmp.lt.s32.totalorder %s186_s25, %s182_s24 }
  0x1f   :  { %p189_p13 = por %p188_p12, %p187_p11 }
  0x21   :  { %p190_p0 = pnand %p189_p13, %p183_p10 }
  0x96   :  { %v86_v10 = vpop.permute.xlu0 %85 }
  0x97   :  { %v88_v11 = vmul.f32 %v86_v10, %v81_v8  ;;  %v89_v12 = vmul.f32 %v86_v10, %v82_v9 }
  0x99   :  { %v100_v13 = vadd.f32 %v89_v12, %v88_v11 }
  0x9b   :  { %101 = vadd.xlane.f32.xlu0 %v100_v13 }
 0x124   :  { %v102_v14 = vpop.xlane.xlu0 %101 }
 0x125   :  { %v103_v15 = vrot.slane %v102_v14, 4 }
 0x127   :  { %v104_v16 = vadd.f32 %v103_v15, %v102_v14 }
 0x129   :  { %v105_v17 = vrot.slane %v104_v16, 2 }
 0x12b   :  { %v106_v18 = vadd.f32 %v105_v17, %v104_v16 }
 0x12d   :  { %v107_v19 = vrot.slane %v106_v18, 1 }
 0x12f   :  { %v108_v20 = vadd.f32 %v107_v19, %v106_v18 }
 0x131   :  { %135 = vpush %v108_v20 }
 0x162   :  { %s136_s2 = spop %135 }
 0x163   :  { %v110_v21 = vstv %s136_s2 }
 0x164   :  { %112 = vst.msk [vmem:[#allocation8] sm:$0x1] %vm111_vm0, %v110_v21 }
 0x165   :  { %193 = shalt.err (!%p190_p0)
}
 0x166   :  { %122 = dma.vmem_to_hbm [thread:$0]  %s120_s1, 16, %s247_s3, [#allocation5]  }
 0x167   :  { %206 = dma.done.wait [#allocation5], 16  }
 0x168   :  { %207 = vsyncadd [#allocation5], 4294967280 }
 0x169   :  { %126 = vsyncpa [#allocation4], 1 }
 0x16a   :  { %127 = vsyncpa [#allocation7], 1 }
 0x16b   :  { %128 = vsyncpa [#allocation5], 1 }

</bundles_post_ra>
